<compile_context>
chip_gen: v6e
topology: v6e:2x2x1
jax: 0.10.0
libtpu: 0.0.40
codegen_flags: <defaults>
</compile_context>

<pallas_src>
import functools
import math

import jax
import jax.numpy as jnp
from jax.experimental import pallas as pl
from jax.experimental.pallas import tpu as pltpu


def kcnn_kernel(x_ref, catsub_ref, projw_ref, projb_ref, convw_ref, convb_ref,
                out_ref, *, word_dim, window):
    """One tile of M = batch*news items.

    x_ref      [tm, L, CIN]    merged (word|entity|context) embeddings (bf16/f32)
    catsub_ref [tm, OUT]       zeros in the first K lanes, cat|subCat embeddings after
    projw_ref  [CIN, FP]       blockdiag(I_D, M_entity.W^T, M_context.W^T), zero-padded
    projb_ref  [1, FP]         [0 | b_entity | b_context | 0]
    convw_ref  [WIN*FP, OUT]   im2col-stacked Conv2d weight, zero-padded rows/cols
    convb_ref  [1, OUT]        conv bias, zero-padded
    out_ref    [tm, OUT]       pooled-conv | category | subCategory
    """
    tm, L, cin = x_ref.shape
    fp = projw_ref.shape[1]
    outp = convw_ref.shape[1]
    pad = (window - 1) // 2

    # (1) Fused projection: one MXU matmul produces [word | ent_proj | ctx_proj].
    x = x_ref[...].reshape(tm * L, cin)      # layout-preserving when L % 8 == 0
    proj = jnp.dot(x, projw_ref[...],
                   preferred_element_type=jnp.float32) + projb_ref[...]
    col = jax.lax.broadcasted_iota(jnp.int32, (1, fp), 1)
    feat = jnp.where(col < word_dim, proj, jnp.tanh(proj))   # f32 elementwise (v5e-safe)
    feat = feat.astype(x_ref.dtype).reshape(tm, L, fp)       # bf16 operand for the conv

    # (2) im2col over the token axis (pad feat once, static slices, lane-aligned concat)
    #     -> a single wide conv matmul (contraction WIN*FP, output OUT).
    if pad > 0:
        zpad = jnp.zeros((tm, pad, fp), feat.dtype)
        fpad = jnp.concatenate([zpad, feat, zpad], axis=1)   # [tm, L + 2*pad, FP]
    else:
        fpad = feat
    cols = jnp.concatenate([fpad[:, w:w + L, :] for w in range(window)],
                           axis=2)                           # [tm, L, WIN*FP]

    g = jnp.dot(cols.reshape(tm * L, window * fp), convw_ref[...],
                preferred_element_type=jnp.float32)          # [tm*L, OUT]
    conv = jnp.maximum(g.reshape(tm, L, outp) + convb_ref[...], 0.0)
    pooled = jnp.max(conv, axis=1)                           # [tm, OUT]; lanes >= K are 0

    # (3) feature_fusion: cat/subCat live in the zero lanes of catsub -> one add.
    out_ref[...] = (pooled + catsub_ref[...]).astype(out_ref.dtype)


def _pick_tile_m(M, tile_m):
    if M <= 8:
        return M
    # Keep >= 2 grid steps so both v7x TensorCores get work under "parallel" semantics.
    half = ((pl.cdiv(M, 2) + 7) // 8) * 8
    tm = min(tile_m, half)
    return max(8, (tm // 8) * 8)


def kcnn_forward(params, title_text, title_mask, title_entity,
                 content_text, content_mask, content_entity,
                 category, subCategory, user_embedding=None,
                 *, tile_m=128, matmul_dtype=jnp.bfloat16,
                 out_dtype=jnp.float32, vmem_limit_bytes=None):
    # title_mask / content_* / user_embedding are accepted for interface parity with
    # the PyTorch module but are not used by KCNN.forward (so they are never DMA'd).
    del title_mask, content_text, content_mask, content_entity, user_embedding

    B, N, L = title_text.shape
    D = params["word_embedding"].shape[1]
    ED = params["entity_embedding"].shape[1]
    CD = params["context_embedding"].shape[1]
    K, _, WIN, _ = params["conv_w"].shape
    CATD = params["category_embedding"].shape[1]
    SUBD = params["subCategory_embedding"].shape[1]
    M = B * N
    CIN = D + ED + CD                       # merged input channels (word|ent|ctx)
    FP = ((3 * D + 127) // 128) * 128       # feat channels padded to lane multiple
    OUT = K + CATD + SUBD                   # 128 in the KCNN config -> lane-dense output

    # --- glue: embedding gathers, merged into ONE bf16 stream (plain JAX) ---
    # TODO(synk): for production M, gather word/entity/context rows in-kernel (scalar-
    # prefetched token ids + DMA) to avoid the HBM round trip of the [M,L,CIN] tensor.
    tt = title_text.reshape(M, L)
    te = title_entity.reshape(M, L)
    x = jnp.concatenate([
        params["word_embedding"].astype(matmul_dtype)[tt],
        params["entity_embedding"].astype(matmul_dtype)[te],
        params["context_embedding"].astype(matmul_dtype)[te]], axis=-1)   # [M, L, CIN]

    cat = params["category_embedding"][category.reshape(M)].astype(jnp.float32)
    sub = params["subCategory_embedding"][subCategory.reshape(M)].astype(jnp.float32)
    # cat/sub parked in the lanes above K; lanes < K are zero so an in-kernel add fuses.
    catsub = jnp.concatenate([jnp.zeros((M, K), jnp.float32), cat, sub], axis=1)  # [M,OUT]

    # --- weight prep (once per call; nn.Linear stores [out, in]) ---
    # blockdiag(I_D, M_entity.W^T, M_context.W^T) : [CIN, FP], zero-padded columns.
    projw = jnp.zeros((CIN, FP), jnp.float32)
    projw = projw.at[:D, :D].set(jnp.eye(D, dtype=jnp.float32))
    projw = projw.at[D:D + ED, D:2 * D].set(params["M_entity_w"].T)
    projw = projw.at[D + ED:CIN, 2 * D:3 * D].set(params["M_context_w"].T)
    projw = projw.astype(matmul_dtype)
    projb = jnp.concatenate([
        jnp.zeros((D,), jnp.float32), params["M_entity_b"], params["M_context_b"],
        jnp.zeros((FP - 3 * D,), jnp.float32)]).reshape(1, FP)

    # Conv2d weight [K, D, WIN, 3] -> im2col-stacked [WIN*FP, OUT], channel-major
    # (word|ent|ctx) per window, K zero-padded to OUT columns.
    wc = jnp.transpose(params["conv_w"], (2, 3, 1, 0)).reshape(WIN, 3 * D, K)
    wc = jnp.pad(wc, ((0, 0), (0, FP - 3 * D), (0, OUT - K)))
    convw = wc.reshape(WIN * FP, OUT).astype(matmul_dtype)
    convb = jnp.pad(params["conv_b"], (0, OUT - K)).reshape(1, OUT).astype(jnp.float32)

    tm = _pick_tile_m(M, tile_m)
    grid = (pl.cdiv(M, tm),)

    if vmem_limit_bytes is None:
        # Rough per-step VMEM bound (pipelined blocks + matmul intermediates) + headroom,
        # clamped well below v7x's 64 MiB physical / above v5e's 16 MiB default scope.
        isz = jnp.dtype(matmul_dtype).itemsize
        rows = tm * L
        est = (2 * tm * L * CIN * isz                       # input stream, double-buffered
               + 4 * tm * OUT * 4                           # catsub + out blocks
               + 2 * (CIN * FP + WIN * FP * OUT) * isz      # weights
               + rows * (FP * 4 + (2 * WIN + 3) * FP * isz + 2 * OUT * 4))
        vmem_limit_bytes = int(min(max(4 * est, 16 << 20), 48 << 20))

    grid_spec = pltpu.PrefetchScalarGridSpec(
        num_scalar_prefetch=0,
        grid=grid,
        in_specs=[
            pl.BlockSpec((tm, L, CIN), lambda i: (i, 0, 0)),
            pl.BlockSpec((tm, OUT), lambda i: (i, 0)),
            # weights: constant block index -> VMEM-resident across grid steps
            pl.BlockSpec((CIN, FP), lambda i: (0, 0)),
            pl.BlockSpec((1, FP), lambda i: (0, 0)),
            pl.BlockSpec((WIN * FP, OUT), lambda i: (0, 0)),
            pl.BlockSpec((1, OUT), lambda i: (0, 0)),
        ],
        out_specs=pl.BlockSpec((tm, OUT), lambda i: (i, 0)),
    )

    flat = pl.pallas_call(
        functools.partial(kcnn_kernel, word_dim=D, window=WIN),
        grid_spec=grid_spec,
        out_shape=jax.ShapeDtypeStruct((M, OUT), out_dtype),
        compiler_params=pltpu.CompilerParams(
            dimension_semantics=("parallel",),
            vmem_limit_bytes=vmem_limit_bytes),
    )(x, catsub, projw, projb, convw, convb)

    return flat.reshape(B, N, OUT)


def _reference_forward(params, title_text, title_entity, category, subCategory):
    we = params["word_embedding"][title_text]                        # [B,N,L,D]
    ee = params["entity_embedding"][title_entity]
    ce = params["context_embedding"][title_entity]
    ent = jnp.tanh(ee @ params["M_entity_w"].T + params["M_entity_b"])
    ctx = jnp.tanh(ce @ params["M_context_w"].T + params["M_context_b"])
    stacked = jnp.stack([we, ent, ctx], axis=-1)                     # [B,N,L,D,3]
    conv_w = params["conv_w"]                                        # [K,D,WIN,3]
    K, _, WIN, _ = conv_w.shape
    pad = (WIN - 1) // 2
    L = title_text.shape[-1]
    sp = jnp.pad(stacked, ((0, 0), (0, 0), (pad, pad), (0, 0), (0, 0)))
    conv = jnp.zeros(title_text.shape[:2] + (L, K), jnp.float32)
    for w in range(WIN):
        conv = conv + jnp.einsum('bnldc,kdc->bnlk',
                                 sp[:, :, w:w + L], conv_w[:, :, w, :])
    conv = jnp.maximum(conv + params["conv_b"], 0.0)
    pooled = conv.max(axis=2)                                        # [B,N,K]
    cat = params["category_embedding"][category]
    sub = params["subCategory_embedding"][subCategory]
    return jnp.concatenate([pooled, cat, sub], axis=2)


if __name__ == "__main__":
    VOCAB, ENT_SIZE = 50, 40
    D, ED, CD = 32, 32, 32           # word / entity / context embedding dims
    K, WIN = 96, 3                   # cnn_kernel_num, cnn_window_size
    CAT_NUM, CATD = 5, 16
    SUB_NUM, SUBD = 7, 16            # K + CATD + SUBD = 128 -> lane-dense output
    B, N, L = 2, 8, 16               # batch, news per sample, max_title_length

    key = jax.random.PRNGKey(0)
    ks = jax.random.split(key, 16)

    lim_e = (5.0 / 3.0) * math.sqrt(6.0 / (ED + D))   # xavier_uniform, tanh gain
    lim_c = (5.0 / 3.0) * math.sqrt(6.0 / (CD + D))

    params = {
        "word_embedding": jax.random.normal(ks[0], (VOCAB, D), jnp.float32) * 0.1,
        "entity_embedding": jax.random.normal(ks[1], (ENT_SIZE, ED), jnp.float32) * 0.1,
        "context_embedding": jax.random.normal(ks[2], (ENT_SIZE, CD), jnp.float32) * 0.1,
        "M_entity_w": jax.random.uniform(ks[3], (D, ED), jnp.float32, -lim_e, lim_e),
        "M_entity_b": jnp.zeros((D,), jnp.float32),
        "M_context_w": jax.random.uniform(ks[4], (D, CD), jnp.float32, -lim_c, lim_c),
        "M_context_b": jnp.zeros((D,), jnp.float32),
        "conv_w": jax.random.normal(ks[5], (K, D, WIN, 3), jnp.float32) * 0.05,
        "conv_b": jax.random.uniform(ks[6], (K,), jnp.float32, -0.05, 0.05),
        "category_embedding": jax.random.uniform(ks[7], (CAT_NUM, CATD), jnp.float32, -0.1, 0.1),
        "subCategory_embedding": jax.random.uniform(ks[8], (SUB_NUM, SUBD), jnp.float32, -0.1, 0.1),
    }
    # initialize(): subCategory_embedding row 0 is zeroed
    params["subCategory_embedding"] = params["subCategory_embedding"].at[0].set(0.0)

    title_text = jax.random.randint(ks[9], (B, N, L), 0, VOCAB, jnp.int32)
    title_entity = jax.random.randint(ks[10], (B, N, L), 0, ENT_SIZE, jnp.int32)
    title_mask = jnp.ones((B, N, L), jnp.float32)            # unused by KCNN.forward
    content_text = jnp.zeros((B, N, L), jnp.int32)           # unused
    content_mask = jnp.ones((B, N, L), jnp.float32)          # unused
    content_entity = jnp.zeros((B, N, L), jnp.int32)         # unused
    category = jax.random.randint(ks[11], (B, N), 0, CAT_NUM, jnp.int32)
    subCategory = jax.random.randint(ks[12], (B, N), 0, SUB_NUM, jnp.int32)

    news_repr = kcnn_forward(params, title_text, title_mask, title_entity,
                             content_text, content_mask, content_entity,
                             category, subCategory, None)
    jax.block_until_ready(news_repr)

    ref = _reference_forward(params, title_text, title_entity, category, subCategory)
    assert news_repr.shape == (B, N, K + CATD + SUBD)
    # bf16 matmul operands (f32 accumulate / bias / tanh / relu / max) -> relaxed tolerance.
    assert jnp.allclose(news_repr, ref, atol=2.5e-2, rtol=2.5e-2), (
        "news representation mismatch: max abs err = "
        f"{float(jnp.max(jnp.abs(news_repr - ref)))}")

    print("KERNEL_OK")
</pallas_src>

<mosaic_0001>
module attributes {stable_mosaic.version = 11 : i64} {
  func.func @kcnn_kernel(%arg0: i32, %arg1: memref<8x16x96xbf16, #tpu.memory_space<vmem>>, %arg2: memref<8x128xf32, #tpu.memory_space<vmem>>, %arg3: memref<96x128xbf16, #tpu.memory_space<vmem>>, %arg4: memref<1x128xf32, #tpu.memory_space<vmem>>, %arg5: memref<384x128xbf16, #tpu.memory_space<vmem>>, %arg6: memref<1x128xf32, #tpu.memory_space<vmem>>, %arg7: memref<8x128xf32, #tpu.memory_space<vmem>>) attributes {dimension_semantics = [#tpu.dimension_semantics<parallel>], iteration_bounds = array<i64: 2>, scalar_prefetch = 0 : i64, scratch_operands = 0 : i64, tpu.core_type = #tpu.core_type<tc>, window_params = [{transform_indices = @transform_0, window_bounds = array<i64: 8, 16, 96>}, {transform_indices = @transform_1, window_bounds = array<i64: 8, 128>}, {pipeline_mode = #tpu.pipeline_mode<synchronous>, transform_indices = @transform_2, window_bounds = array<i64: 96, 128>}, {pipeline_mode = #tpu.pipeline_mode<synchronous>, transform_indices = @transform_3, window_bounds = array<i64: 1, 128>}, {pipeline_mode = #tpu.pipeline_mode<synchronous>, transform_indices = @transform_4, window_bounds = array<i64: 384, 128>}, {pipeline_mode = #tpu.pipeline_mode<synchronous>, transform_indices = @transform_5, window_bounds = array<i64: 1, 128>}, {transform_indices = @transform_6, window_bounds = array<i64: 8, 128>}]} {
    %c0 = arith.constant 0 : index
    %c0_0 = arith.constant 0 : index
    %c0_1 = arith.constant 0 : index
    %0 = vector.load %arg1[%c0, %c0_0, %c0_1] : memref<8x16x96xbf16, #tpu.memory_space<vmem>>, vector<8x16x96xbf16>
    %1 = vector.shape_cast %0 : vector<8x16x96xbf16> to vector<128x96xbf16>
    %c0_2 = arith.constant 0 : index
    %c0_3 = arith.constant 0 : index
    %2 = vector.load %arg3[%c0_2, %c0_3] : memref<96x128xbf16, #tpu.memory_space<vmem>>, vector<96x128xbf16>
    %cst = arith.constant dense<0.000000e+00> : vector<128x128xf32>
    %3 = tpu.matmul %1, %2, %cst {dimension_numbers = #tpu.dot_dimension_numbers<[1], [0], [0], [1], [0, 0, 1, 1], [], []>} : vector<128x96xbf16>, vector<96x128xbf16>, vector<128x128xf32> -> vector<128x128xf32>
    %c0_4 = arith.constant 0 : index
    %c0_5 = arith.constant 0 : index
    %4 = vector.load %arg4[%c0_4, %c0_5] : memref<1x128xf32, #tpu.memory_space<vmem>>, vector<1x128xf32>
    %5 = vector.broadcast %4 : vector<1x128xf32> to vector<128x128xf32>
    %6 = arith.addf %3, %5 : vector<128x128xf32>
    %7 = tpu.iota {dimensions = array<i32: 1>} : vector<1x128xi32>
    %c32_i32 = arith.constant 32 : i32
    %8 = vector.broadcast %c32_i32 : i32 to vector<1x128xi32>
    %9 = arith.cmpi slt, %7, %8 : vector<1x128xi32>
    %10 = math.tanh %6 : vector<128x128xf32>
    %11 = vector.shape_cast %9 : vector<1x128xi1> to vector<1x128xi1>
    %12 = vector.broadcast %11 : vector<1x128xi1> to vector<128x128xi1>
    %13 = arith.select %12, %6, %10 : vector<128x128xi1>, vector<128x128xf32>
    %14 = arith.truncf %13 : vector<128x128xf32> to vector<128x128xbf16>
    %15 = vector.shape_cast %14 : vector<128x128xbf16> to vector<8x16x128xbf16>
    %cst_6 = arith.constant 0.000000e+00 : bf16
    %16 = vector.broadcast %cst_6 : bf16 to vector<8x1x128xbf16>
    %17 = tpu.concatenate %16, %15, %16 in 1 : vector<8x1x128xbf16>, vector<8x16x128xbf16>, vector<8x1x128xbf16> -> vector<8x18x128xbf16>
    %18 = vector.extract_strided_slice %17 {offsets = [0, 0, 0], sizes = [8, 16, 128], strides = [1, 1, 1]} : vector<8x18x128xbf16> to vector<8x16x128xbf16>
    %19 = vector.extract_strided_slice %17 {offsets = [0, 1, 0], sizes = [8, 16, 128], strides = [1, 1, 1]} : vector<8x18x128xbf16> to vector<8x16x128xbf16>
    %20 = vector.extract_strided_slice %17 {offsets = [0, 2, 0], sizes = [8, 16, 128], strides = [1, 1, 1]} : vector<8x18x128xbf16> to vector<8x16x128xbf16>
    %21 = tpu.concatenate %18, %19, %20 in 2 : vector<8x16x128xbf16>, vector<8x16x128xbf16>, vector<8x16x128xbf16> -> vector<8x16x384xbf16>
    %22 = vector.shape_cast %21 : vector<8x16x384xbf16> to vector<128x384xbf16>
    %c0_7 = arith.constant 0 : index
    %c0_8 = arith.constant 0 : index
    %23 = vector.load %arg5[%c0_7, %c0_8] : memref<384x128xbf16, #tpu.memory_space<vmem>>, vector<384x128xbf16>
    %cst_9 = arith.constant dense<0.000000e+00> : vector<128x128xf32>
    %24 = tpu.matmul %22, %23, %cst_9 {dimension_numbers = #tpu.dot_dimension_numbers<[1], [0], [0], [1], [0, 0, 1, 1], [], []>} : vector<128x384xbf16>, vector<384x128xbf16>, vector<128x128xf32> -> vector<128x128xf32>
    %25 = vector.shape_cast %24 : vector<128x128xf32> to vector<8x16x128xf32>
    %c0_10 = arith.constant 0 : index
    %c0_11 = arith.constant 0 : index
    %26 = vector.load %arg6[%c0_10, %c0_11] : memref<1x128xf32, #tpu.memory_space<vmem>>, vector<1x128xf32>
    %27 = vector.shape_cast %26 : vector<1x128xf32> to vector<1x1x128xf32>
    %28 = vector.broadcast %27 : vector<1x1x128xf32> to vector<8x16x128xf32>
    %29 = arith.addf %25, %28 : vector<8x16x128xf32>
    %cst_12 = arith.constant 0.000000e+00 : f32
    %30 = vector.broadcast %cst_12 : f32 to vector<8x16x128xf32>
    %31 = arith.maximumf %29, %30 : vector<8x16x128xf32>
    %cst_13 = arith.constant dense<0xFF800000> : vector<8x128xf32>
    %32 = vector.multi_reduction <maximumf>, %31, %cst_13 [1] : vector<8x16x128xf32> to vector<8x128xf32>
    %c0_14 = arith.constant 0 : index
    %c0_15 = arith.constant 0 : index
    %33 = vector.load %arg2[%c0_14, %c0_15] : memref<8x128xf32, #tpu.memory_space<vmem>>, vector<8x128xf32>
    %34 = arith.addf %32, %33 : vector<8x128xf32>
    %c0_16 = arith.constant 0 : index
    %c0_17 = arith.constant 0 : index
    %35 = vector.load %arg7[%c0_16, %c0_17] : memref<8x128xf32, #tpu.memory_space<vmem>>, vector<8x128xf32>
    tpu.vector_store %arg7[%c0_16, %c0_17], %34 {strides = array<i32>} : memref<8x128xf32, #tpu.memory_space<vmem>>, vector<8x128xf32>,
    return
  }
  func.func @transform_0(%arg0: i32) -> (i32, i32, i32) {
    %c0_i32 = arith.constant 0 : i32
    %c0_i32_0 = arith.constant 0 : i32
    %c0_i32_1 = arith.constant 0 : i32
    return %arg0, %c0_i32, %c0_i32_0 : i32, i32, i32
  }
  func.func @transform_1(%arg0: i32) -> (i32, i32) {
    %c0_i32 = arith.constant 0 : i32
    %c0_i32_0 = arith.constant 0 : i32
    return %arg0, %c0_i32 : i32, i32
  }
  func.func @transform_2(%arg0: i32) -> (i32, i32) {
    %c0_i32 = arith.constant 0 : i32
    %c0_i32_0 = arith.constant 0 : i32
    %c0_i32_1 = arith.constant 0 : i32
    return %c0_i32, %c0_i32_0 : i32, i32
  }
  func.func @transform_3(%arg0: i32) -> (i32, i32) {
    %c0_i32 = arith.constant 0 : i32
    %c0_i32_0 = arith.constant 0 : i32
    %c0_i32_1 = arith.constant 0 : i32
    return %c0_i32, %c0_i32_0 : i32, i32
  }
  func.func @transform_4(%arg0: i32) -> (i32, i32) {
    %c0_i32 = arith.constant 0 : i32
    %c0_i32_0 = arith.constant 0 : i32
    %c0_i32_1 = arith.constant 0 : i32
    return %c0_i32, %c0_i32_0 : i32, i32
  }
  func.func @transform_5(%arg0: i32) -> (i32, i32) {
    %c0_i32 = arith.constant 0 : i32
    %c0_i32_0 = arith.constant 0 : i32
    %c0_i32_1 = arith.constant 0 : i32
    return %c0_i32, %c0_i32_0 : i32, i32
  }
  func.func @transform_6(%arg0: i32) -> (i32, i32) {
    %c0_i32 = arith.constant 0 : i32
    %c0_i32_0 = arith.constant 0 : i32
    return %arg0, %c0_i32 : i32, i32
  }
}

</mosaic_0001>

<bundles_post_ra>
// kernel: tpu_custom_call.1
= control target key start
LH: loop header
LB: loop body
LE: loop exit
PB: predicated region body
PF: predicated region fallthrough
CT: control target
= control target key end

     0   :  { %s2570_s0 = inlined_call_operand.hbm [shape: bf16[16,16,96], index: 0, kind: input, shape index: {}]   ;;  %s2571_s1 = inlined_call_operand.hbm [shape: f32[16,128], index: 1, kind: input, shape index: {}]   ;;  %s2572_s2 = inlined_call_operand.hbm [shape: bf16[96,128], index: 2, kind: input, shape index: {}]   ;;  %s2573_s3 = inlined_call_operand.vmem [shape: f32[1,128], index: 3, kind: input, shape index: {}]   ;;  %s2574_s4 = inlined_call_operand.hbm [shape: bf16[384,128], index: 4, kind: input, shape index: {}]   ;;  %s2575_s5 = inlined_call_operand.vmem [shape: f32[1,128], index: 5, kind: input, shape index: {}]   ;;  %s2576_s6 = inlined_call_operand.hbm [shape: f32[16,128], index: 6, kind: output, shape index: {}]  }
   0x1   :  { %2583 = sst [smem:[#allocation17_spill]] %s2570_s0 }
   0x2   :  { %2584 = sst [smem:[#allocation18_spill]] %s2572_s2 }
   0x3   :  { %2585 = sst [smem:[#allocation19_spill]] %s2574_s4 }
   0x4   :  { %11 = vsyncpa [#allocation3], 0 }
   0x5   :  { %13 = vsyncpa [#allocation3 + $0x1], 0 }
   0x6   :  { %14 = vsyncpa [#allocation6], 0 }
   0x7   :  { %16 = vsyncpa [#allocation6 + $0x1], 0 }
   0x8   :  { %17 = vsyncpa [#allocation9], 0 }
   0x9   :  { %18 = vsyncpa [#allocation4], 0 }
   0xa   :  { %20 = vsyncpa [#allocation4 + $0x1], 0  ;;  %s2122_s21 = smov 0   ;;  %s2124_s22 = smov 0  }
   0xb   :  { %s2126_s23 = smov 0   ;;  %s2128_s24 = smov 0  }
   0xc LB: > { %s2143_s25 = sadd.s32 4294967295, %s2078_s24   ;;  %s1525_s26 = sadd.s32 4294967294, %s2078_s24   ;;  %s2078_s24 = sphi %s2128_s24, %s2615_s24   ;;  %s2074_s23 = sphi %s2126_s23, %s2614_s23   ;;  %s2070_s22 = sphi %s2124_s22, %s2613_s22   ;;  %s2066_s21 = sphi %s2122_s21, %s2612_s21  }
   0xd   : > { %p46_p0 = scmp.ne.s32.totalorder %s2070_s22, %s2066_s21  ;;  %p2579_p1 = scmp.eq.s32.totalorder %s2143_s25, 0 }
   0xe   : > { %p180_p2 = scmp.eq.s32.totalorder %s2143_s25, 1  ;;  %p186_p3 = scmp.eq.s32.totalorder %s1525_s26, 1 }
   0xf   : > { %p2152_p4 = por %p2579_p1, %p46_p0  ;;  %p1526_p5 = scmp.ge.s32.totalorder %s2078_s24, 1 }
  0x10   : > { %p2157_p6 = por %p186_p3, %p46_p0  ;;  %p193_p7 = scmp.lt.s32.totalorder %s2078_s24, 3 }
  0x11   : > { %s2586_s27 = scalar_select %p2152_p4, 1, 0 }
  0x12   : > { %s2587_s28 = scalar_select %p2157_p6, 1, 0 }
  0x13   : > { %p2162_p8 = pnand %p1526_p5, %p193_p7  ;;  %s2080_s30 = smov [#allocation7]  }
  0x14   : > { %s205_s7 = sshll.u32 %s2080_s30, 4  ;;  %s2081_s9 = smov [#allocation8]   ;;  %s206_s7 = int_to_ptr.vmem [resolvable:$true] %s205_s7 }
  0x15   : > { %s2588_s29 = scalar_select %p2162_p8, 1, 0 }
  0x16   : > { %p1764_p9 = pneg %p2162_p8  ;;  %s221_s10 = sshll.u32 %s2081_s9, 4  ;;  %s222_s10 = int_to_ptr.vmem [resolvable:$true] %s221_s10 }
  0x17   : > { %s1905_s11 = scalar_lea.vmem %s206_s7, 768  ;;  %p1913_p5 = scmp.lt.s32.totalorder %s206_s7, %s206_s7 }
  0x18   : > { %p2171_p11 = pnand %p1764_p9, %p2579_p1  ;;  %p1906_p13 = scmp.ne.s32.totalorder %s206_s7, %s1905_s11 }
  0x19   : > { %p1914_p7 = scmp.lt.s32.totalorder %s1905_s11, %s1905_s11 }
  0x1a   : > { %p1896_p12 = pneg %p2171_p11 }
  0x1b   : > { %p1915_p10 = por %p1914_p7, %p1913_p5 }
  0x1c   : > { %p1908_p0 = pnand %p1906_p13, %p1896_p12 }
  0x1e   : > { %p1909_p3 = pneg %p1908_p0 }
  0x20   : > { %p1916_p9 = pnand %p1915_p10, %p1909_p3 }
  0x22   : > { %1919 = shalt.err (!%p1916_p9)
}
  0x23   : > { %s2577_s12 = smov 64   ;;  %s2578_s13 = smov 4  }
  0x24   : > { %s2590_s2 = sld [smem:[#allocation18_spill]]  ;;  %s1931_s16 = scalar_lea.vmem %s222_s10, 3072 }
  0x25   : > { %p1932_p13 = scmp.ne.s32.totalorder %s222_s10, %s1931_s16  ;;  %p1939_p10 = scmp.lt.s32.totalorder %s222_s10, %s222_s10 }
  0x26   : > { %p1940_p3 = scmp.lt.s32.totalorder %s1931_s16, %s1931_s16 }
  0x27   : > { %p1934_p0 = pnand %p1932_p13, %p1896_p12 }
  0x28   : > { %p1941_p7 = por %p1940_p3, %p1939_p10 }
  0x29   : > { %p1935_p5 = pneg %p1934_p0 }
  0x2a   : > { %1767 = dma.hbm_to_vmem [thread:$0]  (!%p2171_p11), %s2590_s2, 768, %s206_s7, [#allocation6], %s2577_s12, %s2577_s12, %s2578_s13  }
  0x2b   : > { %p1942_p9 = pnand %p1941_p7, %p1935_p5 }
  0x2d   : > { %1945 = shalt.err (!%p1942_p9)
}
  0x2e   : > { %s2591_s4 = sld [smem:[#allocation19_spill]]  ;;  %s2200_s19 = sadd.s32 1, %s2078_s24  }
  0x2f   : > { %s33_s20 = sadd.s32 1, %s2074_s23  ;;  %s30_s26 = ssub.s32 %s2078_s24, %s2200_s19 }
  0x30   : > { %p40_p12 = scmp.ne.s32.totalorder %s2074_s23, %s2070_s22  ;;  %p31_p13 = scmp.eq.s32.totalorder %s30_s26, 0 }
  0x31   : > { %p41_p0 = scmp.eq.s32.totalorder %s2078_s24, 0  ;;  %p1784_p10 = scmp.lt.s32.totalorder %s2078_s24, 2 }
  0x32   : > { %p2210_p5 = por %p180_p2, %p40_p12  ;;  %s2219_s8 = sand.u32 1, %s2074_s23  }
  0x33   : > { %s2216_s7 = scalar_select %p31_p13, %s2074_s23, %s33_s20  }
  0x34   : > { %1770 = dma.hbm_to_vmem [thread:$0]  (!%p2171_p11), %s2591_s4, 3072, %s222_s10, [#allocation9], %s2577_s12, %s2577_s12, %s2578_s13  }
  0x35   : > { %s2592_s30 = scalar_select %p2210_p5, 1, 0 }
  0x36   : > { %2593 = sst [smem:[#allocation16_spill]] %s2216_s7  ;;  %p42_p3 = por %p41_p0, %p40_p12 }
  0x37   : > { %s1530_s9 = sshll.u32 %s2219_s8, 6  ;;  %s1595_s10 = sshll.u32 %s2078_s24, 10 }
  0x38   : > { %s2594_s0 = sld [smem:[#allocation17_spill]]  ;;  %s242_s16 = scalar_lea.vmem [#allocation2], %s1530_s9 }
  0x39   : > { %s250_s17 = sshll.u32 %s242_s16, 4  ;;  %p2230_p2 = pnand %p1784_p10, %p42_p3  ;;  %s2228_s17 = int_to_ptr.vmem [resolvable:$true] %s250_s17 }
  0x3a   : > { %s239_s12 = scalar_lea.sflag [#allocation3], %s2219_s8 }
  0x3b   : > { %p1948_p7 = pneg %p2230_p2 }
  0x3e   : > { %s2226_s15 = scalar_lea.hbm %s2594_s0, %s1595_s10  ;;  %s1951_s11 = scalar_lea.hbm %s2594_s0, 2048 }
  0x3f   : > { %s1946_s13 = scalar_lea.hbm %s2226_s15, 1024  ;;  %p1952_p13 = scmp.lt.s32.totalorder %s2226_s15, %s2594_s0 }
  0x40   : > { %p1947_p11 = scmp.ne.s32.totalorder %s2226_s15, %s1946_s13  ;;  %p1953_p0 = scmp.lt.s32.totalorder %s1951_s11, %s1946_s13 }
  0x42   : > { %p1949_p9 = pnand %p1948_p7, %p1947_p11  ;;  %p1954_p10 = por %p1953_p0, %p1952_p13 }
  0x44   : > { %p1950_p12 = pneg %p1949_p9 }
  0x46   : > { %p1955_p3 = pnand %p1954_p10, %p1950_p12 }
  0x48   : > { %1958 = shalt.err (!%p1955_p3)
}
  0x49   : > { %s1959_s20 = scalar_lea.vmem %s2228_s17, 1024  ;;  %s2084_s9 = smov [#allocation2]  }
  0x4a   : > { %p1960_p1 = scmp.ne.s32.totalorder %s2228_s17, %s1959_s20  ;;  %s1964_s10 = sshll.u32 %s2084_s9, 4  ;;  %s1965_s10 = int_to_ptr.vmem [resolvable:$false] %s1964_s10 }
  0x4b   : > { %s1966_s26 = scalar_lea.vmem %s1965_s10, 2048  ;;  %p1967_p6 = scmp.lt.s32.totalorder %s2228_s17, %s1965_s10 }
  0x4c   : > { %p1962_p11 = pnand %p1960_p1, %p1948_p7  ;;  %p1968_p5 = scmp.lt.s32.totalorder %s1966_s26, %s1959_s20 }
  0x4e   : > { %p1963_p9 = pneg %p1962_p11  ;;  %p1969_p4 = por %p1968_p5, %p1967_p6 }
  0x50   : > { %p1970_p13 = pnand %p1969_p4, %p1963_p9 }
  0x52   : > { %1973 = shalt.err (!%p1970_p13)
}
  0x53   : > { %s2596_s13 = smov 4   ;;  %s2597_s11 = smov 64  }
  0x54   : > { %1774 = dma.hbm_to_vmem [thread:$0]  (!%p2230_p2), %s2226_s15, 1024, %s2228_s17, %s239_s12, %s2597_s11, %s2597_s11, %s2596_s13  }
  0x55   : > { %s1535_s14 = sshll.u32 %s2078_s24, 7  ;;  %s2598_s9 = sshll.u32 %s2219_s8, 3 }
  0x56   : > { %s2270_s26 = scalar_lea.hbm %s2571_s1, %s1535_s14  ;;  %s264_s10 = scalar_lea.vmem [#allocation5], %s2598_s9 }
  0x57   : > { %s271_s0 = sshll.u32 %s264_s10, 4  ;;  %s2599_s2 = sand.u32 1, %s2078_s24   ;;  %s272_s0 = int_to_ptr.vmem [resolvable:$true] %s271_s0 }
  0x58   : > { %s261_s4 = scalar_lea.sflag [#allocation6], %s2599_s2  ;;  %s1974_s7 = scalar_lea.hbm %s2270_s26, 128 }
  0x59   : > { %p1975_p1 = scmp.ne.s32.totalorder %s2270_s26, %s1974_s7  ;;  %s1979_s17 = scalar_lea.hbm %s2571_s1, 256 }
  0x5a   : > { %p1980_p5 = scmp.lt.s32.totalorder %s2270_s26, %s2571_s1  ;;  %p1981_p12 = scmp.lt.s32.totalorder %s1979_s17, %s1974_s7 }
  0x5b   : > { %p1977_p4 = pnand %p1975_p1, %p1948_p7 }
  0x5c   : > { %p1982_p0 = por %p1981_p12, %p1980_p5 }
  0x5d   : > { %p1978_p6 = pneg %p1977_p4 }
  0x5f   : > { %p1983_p10 = pnand %p1982_p0, %p1978_p6 }
  0x61   : > { %1986 = shalt.err (!%p1983_p10)
}
  0x62   : > { %s1987_s11 = scalar_lea.vmem %s272_s0, 128  ;;  %s2085_s2 = smov [#allocation5]  }
  0x63   : > { %p1988_p3 = scmp.ne.s32.totalorder %s272_s0, %s1987_s11  ;;  %s1992_s14 = sshll.u32 %s2085_s2, 4  ;;  %s1993_s14 = int_to_ptr.vmem [resolvable:$false] %s1992_s14 }
  0x64   : > { %s1994_s16 = scalar_lea.vmem %s1993_s14, 256  ;;  %p1995_p13 = scmp.lt.s32.totalorder %s272_s0, %s1993_s14 }
  0x65   : > { %p1990_p11 = pnand %p1988_p3, %p1948_p7  ;;  %p1996_p1 = scmp.lt.s32.totalorder %s1994_s16, %s1987_s11 }
  0x67   : > { %p1991_p9 = pneg %p1990_p11  ;;  %p1997_p4 = por %p1996_p1, %p1995_p13 }
  0x69   : > { %p1998_p8 = pnand %p1997_p4, %p1991_p9 }
  0x6b   : > { %2001 = shalt.err (!%p1998_p8)
}
  0x6c   : > { %1777 = dma.hbm_to_vmem [thread:$0]  (!%p2230_p2), %s2270_s26, 128, %s272_s0, %s261_s4  }
  0x6d   : > { %p2600_p6 = scmp.ne.s32.totalorder %s2588_s29, 0 }
  0x6e   : > { %s2297_s7 = sand.u32 (!%p2600_p6), 1, %s2070_s22   ;;  %p2601_p7 = scmp.ne.s32.totalorder (!%p2600_p6), %s2586_s27, 0 }
  0x6f   : > { %280 = sbr.rel (%p2600_p6) target bundleno = 682 (0x2aa), region = 44  ;;  %s1537_s20 = sshll.u32 (!%p2600_p6), %s2297_s7, 6 }
  0x70   : > { %s283_s9 = scalar_lea.sflag (!%p2600_p6), [#allocation3], %s2297_s7  ;;  %s2301_s10 = scalar_lea.vmem (!%p2600_p6), [#allocation2], %s1537_s20 }
  0x74   : > { %2045 = dma.done.wait (%p2601_p7), %s283_s9, 1024  }
  0x75   : > { %2047 = vsyncadd (%p2601_p7), %s283_s9, 4294966272  ;;  %s291_s0 = sand.u32 1, %s2143_s25   ;;  %s1538_s4 = sshll.u32 %s2297_s7, 3 }
  0x76   : > { %s292_s29 = scalar_lea.sflag [#allocation6], %s291_s0  ;;  %s2311_s18 = scalar_lea.vmem [#allocation5], %s1538_s4 }
  0x77   : > { %2049 = dma.done.wait (%p2601_p7), %s292_s29, 128  }
  0x78   : > { %2051 = vsyncadd (%p2601_p7), %s292_s29, 4294967168  ;;  %p2602_p8 = scmp.eq.s32.totalorder %s2143_s25, 0 }
  0x7a   : > { %2053 = dma.done.wait (%p2602_p8), [#allocation6], 768   ;;  %p2603_p2 = pmov %p2602_p8 }
  0x7c   : > { %2055 = vsyncadd (%p2603_p2), [#allocation6], 4294966528  ;;  %p2604_p5 = pmov %p2603_p2 }
  0x7d   : > { %p2605_p12 = pmov %p2603_p2 }
  0x7e   : > { %2057 = dma.done.wait (%p2604_p5), [#allocation9], 3072  }
  0x7f   : > { %2059 = vsyncadd (%p2605_p12), [#allocation9], 4294964224  ;;  %v1824_v0 = vld [vmem:[#allocation7 + $0x28] sm:$0xff]   ;;  %v1825_v1 = vld [vmem:[#allocation7 + $0x20] sm:$0xff]   ;;  %vm450_vm0 = vcmask 785408   ;;  %v572_v49 = vlaneseq  ;;  %vm689_vm2 = vcmask 1040384  }
  0x80   : > { %1690 = vmatprep.subr.bf16.mxu0 %v1824_v0  ;;  %v1826_v2 = vld [vmem:[#allocation7 + $0x18] sm:$0xff]   ;;  %v1830_v3 = vld [vmem:[%s2301_s10] sm:$0xff]   ;;  %v1828_v5 = vld [vmem:[#allocation7 + $0x8] sm:$0xff]   ;;  %vm690_vm3 = vsmask.f32 256  ;;  %vm829_vm5 = vcmask 1046528  }
  0x81   : > { %1691 = vmatpush3.bf16.msra.mxu0 %v1824_v0  ;;  %v1827_v4 = vld [vmem:[#allocation7 + $0x10] sm:$0xff]   ;;  %1702 = vmatprep.mubr.msk.bf16.mxu0 %vm450_vm0, %v1830_v3  ;;  %v1829_v6 = vld [vmem:[#allocation7] sm:$0xff]   ;;  %v1831_v7 = vld [vmem:[%s2301_s10 + $0x8] sm:$0xff]   ;;  %v2353_v54 = vand.u32 127, %v572_v49  ;;  %vm708_vm6 = vsmask.f32 7424 }
  0x82   : > { %1692 = vmatprep.subr.bf16.mxu0 %v1825_v1  ;;  %v1832_v8 = vld [vmem:[%s2301_s10 + $0x10] sm:$0xff]   ;;  %v1833_v9 = vld [vmem:[%s2301_s10 + $0x18] sm:$0xff]   ;;  %v1834_v10 = vld [vmem:[%s2301_s10 + $0x20] sm:$0xff]   ;;  %vm1377_vm7 = vcmask 1041409   ;;  %vm1380_vm8 = vcmask 1042434   ;;  %vm1383_vm9 = vcmask 1043459  }
  0x83   : > { %v1835_v11 = vld [vmem:[%s2301_s10 + $0x28] sm:$0xff]   ;;  %v1836_v12 = vld [vmem:[%s2301_s10 + $0x30] sm:$0xff]   ;;  %v1837_v13 = vld [vmem:[%s2301_s10 + $0x38] sm:$0xff]   ;;  %vm574_vm1 = vcmp.lt.s32.totalorder %v2353_v54, 32  ;;  %vm1386_vm10 = vcmask 1044484   ;;  %vm1389_vm11 = vcmask 1045509  }
  0x84   : > { %v1838_v14 = vld [vmem:[#allocation8 + $0xb8] sm:$0xff]   ;;  %v1840_v16 = vld [vmem:[#allocation8 + $0xb0] sm:$0xff]   ;;  %v1843_v19 = vld [vmem:[#allocation8 + $0xa8] sm:$0xff]   ;;  %vm1392_vm12 = vcmask 1046534   ;;  %s1591_s17 = sshll.u32 %s2143_s25, 7  ;;  %s336_s13 = scalar_lea.vmem [#allocation10], %s1538_s4 }
  0x85   : > { %1693 = vmatpush3.bf16.msra.mxu0 %v1825_v1  ;;  %v1839_v15 = vld [vmem:[#allocation8 + $0x78] sm:$0xff]   ;;  %v1842_v18 = vld [vmem:[#allocation8 + $0x70] sm:$0xff]   ;;  %v1845_v21 = vld [vmem:[#allocation8 + $0x68] sm:$0xff]   ;;  %s1413_s8 = sshll.u32 %s336_s13, 4  ;;  %vm1395_vm13 = vcmask 1047559   ;;  %s2533_s14 = scalar_lea.hbm %s2576_s6, %s1591_s17  ;;  %s1414_s8 = int_to_ptr.vmem [resolvable:$true] %s1413_s8 }
  0x86   : > { %1694 = vmatprep.subr.bf16.mxu0 %v1826_v2  ;;  %v1841_v17 = vld [vmem:[#allocation8 + $0x38] sm:$0xff]   ;;  %1610 = vmatprep.subr.bf16.mxu1 %v1839_v15  ;;  %v1844_v20 = vld [vmem:[#allocation8 + $0x30] sm:$0xff]   ;;  %v1846_v22 = vld [vmem:[#allocation8 + $0xa0] sm:$0xff]   ;;  %s1400_s16 = scalar_lea.sflag [#allocation4], %s2297_s7  ;;  %s2002_s20 = scalar_lea.vmem %s1414_s8, 128 }
  0x87   : > { %1611 = vmatpush3.bf16.msra.mxu1 %v1841_v17  ;;  %v1847_v23 = vld [vmem:[#allocation8 + $0x28] sm:$0xff]   ;;  %v1848_v24 = vld [vmem:[#allocation8 + $0x60] sm:$0xff]   ;;  %v1849_v25 = vld [vmem:[#allocation8 + $0x98] sm:$0xff]   ;;  %p2003_p0 = scmp.ne.s32.totalorder %s1414_s8, %s2002_s20  ;;  %p2608_p10 = scmp.ne.s32.totalorder %s2592_s30, 0 }
  0x88   : > { %1612 = vmatprep.subr.bf16.mxu1 %v1842_v18  ;;  %v1850_v26 = vld [vmem:[#allocation8 + $0x20] sm:$0xff]   ;;  %v1851_v27 = vld [vmem:[#allocation8 + $0x58] sm:$0xff]   ;;  %v1852_v28 = vld [vmem:[#allocation8 + $0x90] sm:$0xff]   ;;  %s2086_s25 = smov [#allocation10]  }
  0x89   : > { %1695 = vmatpush3.bf16.msra.mxu0 %v1826_v2  ;;  %v1853_v29 = vld [vmem:[#allocation8 + $0x18] sm:$0xff]   ;;  %v1854_v30 = vld [vmem:[#allocation8 + $0x50] sm:$0xff]   ;;  %v1855_v31 = vld [vmem:[#allocation8 + $0x88] sm:$0xff]   ;;  %p2004_p3 = pnand %p2003_p0, %p2608_p10  ;;  %s2006_s9 = sshll.u32 %s2086_s25, 4  ;;  %s2007_s9 = int_to_ptr.vmem [resolvable:$false] %s2006_s9 }
  0x8a   : > { %1696 = vmatprep.subr.bf16.mxu0 %v1827_v4  ;;  %v1856_v32 = vld [vmem:[#allocation8 + $0x10] sm:$0xff]   ;;  %v1857_v33 = vld [vmem:[#allocation8 + $0x48] sm:$0xff]   ;;  %v1858_v34 = vld [vmem:[#allocation8 + $0x80] sm:$0xff]   ;;  %s2008_s10 = scalar_lea.vmem %s2007_s9, 256  ;;  %p2009_p9 = scmp.lt.s32.totalorder %s1414_s8, %s2007_s9 }
  0x8b   : > { %1613 = vmatpush3.bf16.msra.mxu1 %v1844_v20  ;;  %v1859_v35 = vld [vmem:[#allocation8 + $0x8] sm:$0xff]   ;;  %v1860_v36 = vld [vmem:[#allocation8 + $0x40] sm:$0xff]   ;;  %vm2380_vm4 = vmand %vm689_vm2, %vm690_vm3  ;;  %p2005_p11 = pneg %p2004_p3  ;;  %p2010_p13 = scmp.lt.s32.totalorder %s2008_s10, %s2002_s20 }
  0x8c   : > { %1614 = vmatprep.subr.bf16.mxu1 %v1845_v21  ;;  %v1861_v37 = vld [vmem:[#allocation8] sm:$0xff]  }
  0x8d   : > { %1697 = vmatpush3.bf16.msra.mxu0 %v1827_v4  ;;  %v2344_v38 = vld [vmem:[%s2573_s3] ss:$0 sm:$0xff]  ;;  %p2011_p1 = por %p2010_p13, %p2009_p9 }
  0x8e   : > { %1698 = vmatprep.subr.bf16.mxu0 %v1828_v5 }
  0x8f   : > { %1615 = vmatpush3.bf16.msra.mxu1 %v1847_v23  ;;  %p2012_p4 = pnand %p2011_p1, %p2005_p11 }
  0x90   : > { %1616 = vmatprep.subr.bf16.mxu1 %v1848_v24 }
  0x91   : > { %1699 = vmatpush3.bf16.msra.mxu0 %v1828_v5 }
  0x92   : > { %1700 = vmatprep.subr.bf16.mxu0 %v1829_v6 }
  0x93   : > { %1617 = vmatpush3.bf16.msra.mxu1 %v1850_v26 }
  0x94   : > { %1618 = vmatprep.subr.bf16.mxu1 %v1851_v27 }
  0x95   : > { %1701 = vmatpush3.bf16.msra.mxu0 %v1829_v6 }
  0x96   : > { %1718 = vmatprep.subr.bf16.mxu0 %v1838_v14 }
  0x97   : > { %1619 = vmatpush3.bf16.msra.mxu1 %v1853_v29 }
  0x98   : > { %1703 = vmatmul.mubr.msk.bf16.vlgmr.msra.gmra.mxu0 %vm450_vm0, %v1831_v7  ;;  %1620 = vmatprep.subr.bf16.mxu1 %v1854_v30 }
  0x99   : > { %1706 = vmatprep.mubr.msk.bf16.mxu0 %vm450_vm0, %v1832_v8  ;;  %1719 = vmatpush3.bf16.msra.mxu0 %v1838_v14 }
  0x9a   : > { %1720 = vmatprep.subr.bf16.mxu0 %v1840_v16 }
  0x9b   : > { %1621 = vmatpush3.bf16.msra.mxu1 %v1856_v32 }
  0x9c   : > { %1622 = vmatprep.subr.bf16.mxu1 %v1857_v33 }
  0x9d   : > { %1721 = vmatpush3.bf16.msra.mxu0 %v1840_v16 }
  0x9e   : > { %1722 = vmatprep.subr.bf16.mxu0 %v1843_v19 }
  0x9f   : > { %1623 = vmatpush3.bf16.msra.mxu1 %v1859_v35 }
  0xa0   : > { %1707 = vmatmul.mubr.msk.bf16.gmra.mxu0 %vm450_vm0, %v1833_v9  ;;  %1624 = vmatprep.subr.bf16.mxu1 %v1860_v36 }
  0xa1   : > { %1710 = vmatprep.mubr.msk.bf16.mxu0 %vm450_vm0, %v1834_v10  ;;  %1723 = vmatpush3.bf16.msra.mxu0 %v1843_v19 }
  0xa2   : > { %1724 = vmatprep.subr.bf16.mxu0 %v1846_v22 }
  0xa3   : > { %1625 = vmatpush3.bf16.msra.mxu1 %v1861_v37 }
  0xa5   : > { %1725 = vmatpush3.bf16.msra.mxu0 %v1846_v22 }
  0xa6   : > { %1726 = vmatprep.subr.bf16.mxu0 %v1849_v25 }
  0xa8   : > { %1711 = vmatmul.mubr.msk.bf16.gmra.mxu0 %vm450_vm0, %v1835_v11 }
  0xa9   : > { %1714 = vmatprep.mubr.msk.bf16.mxu0 %vm450_vm0, %v1836_v12  ;;  %1727 = vmatpush3.bf16.msra.mxu0 %v1849_v25 }
  0xaa   : > { %1728 = vmatprep.subr.bf16.mxu0 %v1852_v28 }
  0xad   : > { %1729 = vmatpush3.bf16.msra.mxu0 %v1852_v28 }
  0xae   : > { %1730 = vmatprep.subr.bf16.mxu0 %v1855_v31 }
  0xb0   : > { %1715 = vmatmul.mubr.msk.bf16.gmra.mxu0 %vm450_vm0, %v1837_v13 }
  0xb1   : > { %1731 = vmatpush3.bf16.msra.mxu0 %v1855_v31 }
  0xb2   : > { %1732 = vmatprep.subr.bf16.mxu0 %v1858_v34 }
  0xb5   : > { %1733 = vmatpush3.bf16.msra.mxu0 %v1858_v34 }
 0x158   : > { %v1704_v39 = vpop.f32.mrf.mxu0 }
 0x159   : > { %v518_v40 = vadd.f32 %v1704_v39, %v2344_v38 }
 0x15a   : > { %v509_v41 = vpop.f32.mrf.mxu0 }
 0x15b   : > { %v510_v42 = vadd.f32 %v2344_v38, %v509_v41  ;;  %1862 = vtanh.f32 %v518_v40 }
 0x15c   : > { %v1705_v43 = vpop.f32.mrf.mxu0 }
 0x15d   : > { %v521_v44 = vadd.f32 %v1705_v43, %v2344_v38  ;;  %1864 = vtanh.f32 %v510_v42 }
 0x15e   : > { %v512_v45 = vpop.f32.mrf.mxu0 }
 0x15f   : > { %1866 = vtanh.f32 %v521_v44  ;;  %v513_v46 = vadd.f32 %v2344_v38, %v512_v45 }
 0x160   : > { %v1708_v47 = vpop.f32.mrf.mxu0 }
 0x161   : > { %1868 = vtanh.f32 %v513_v46  ;;  %v534_v48 = vadd.f32 %v1708_v47, %v2344_v38 }
 0x162   : > { %v525_v50 = vpop.f32.mrf.mxu0 }
 0x163   : > { %1870 = vtanh.f32 %v534_v48  ;;  %v526_v51 = vadd.f32 %v2344_v38, %v525_v50 }
 0x164   : > { %v1709_v52 = vpop.f32.mrf.mxu0 }
 0x165   : > { %1872 = vtanh.f32 %v526_v51  ;;  %v537_v53 = vadd.f32 %v1709_v52, %v2344_v38 }
 0x166   : > { %v528_v55 = vpop.f32.mrf.mxu0 }
 0x167   : > { %1874 = vtanh.f32 %v537_v53  ;;  %v529_v56 = vadd.f32 %v2344_v38, %v528_v55 }
 0x168   : > { %v1712_v57 = vpop.f32.mrf.mxu0  ;;  %v1863_v59 = vpop.eup %1862 }
 0x169   : > { %1876 = vtanh.f32 %v529_v56  ;;  %v2357_v58 = vadd.f32 %v1712_v57, %v2344_v38  ;;  %v595_v1 = vsel %vm574_vm1, %v518_v40, %v1863_v59 }
 0x16a   : > { %v541_v60 = vpop.f32.mrf.mxu0  ;;  %v1865_v61 = vpop.eup %1864 }
 0x16b   : > { %1878 = vtanh.f32 %v2357_v58  ;;  %v2362_v62 = vadd.f32 %v2344_v38, %v541_v60  ;;  %v593_v7 = vsel %vm574_vm1, %v510_v42, %v1865_v61 }
 0x16c   : > { %v1867_v63 = vpop.eup %1866  ;;  %v1713_v0 = vpop.f32.mrf.mxu0 }
 0x16d   : > { %v596_v2 = vsel %vm574_vm1, %v521_v44, %v1867_v63  ;;  %1880 = vtanh.f32 %v2362_v62  ;;  %v2370_v3 = vadd.f32 %v1713_v0, %v2344_v38 }
 0x16e   : > { %v1869_v4 = vpop.eup %1868  ;;  %v610_v5 = vpack.c.bf16 %v596_v2, %v595_v1  ;;  %v544_v6 = vpop.f32.mrf.mxu0 }
 0x16f   : > { %v594_v8 = vsel %vm574_vm1, %v513_v46, %v1869_v4  ;;  %1882 = vtanh.f32 %v2370_v3  ;;  %v2378_v9 = vadd.f32 %v2344_v38, %v544_v6 }
 0x170   : > { %v1871_v10 = vpop.eup %1870  ;;  %v625_v11 = vshrl.u32 %v610_v5, 16  ;;  %v609_v12 = vpack.c.bf16 %v594_v8, %v593_v7  ;;  %v1716_v13 = vpop.f32.mrf.mxu0  ;;  %v628_v18 = vshll.u32 %v610_v5, 16 }
 0x171   : > { %1884 = vtanh.f32 %v2378_v9  ;;  %v2386_v15 = vadd.f32 %v1716_v13, %v2344_v38  ;;  %v599_v22 = vsel %vm574_vm1, %v534_v48, %v1871_v10 }
 0x172   : > { %v1873_v16 = vpop.eup %1872  ;;  %v627_v17 = vrot.slane %v625_v11, 7  ;;  %v618_v19 = vshrl.u32 %v609_v12, 16  ;;  %v557_v20 = vpop.f32.mrf.mxu0  ;;  %v621_v21 = vshll.u32 %v609_v12, 16 }
 0x173   : > { %1886 = vtanh.f32 %v2386_v15  ;;  %v2392_v23 = vadd.f32 %v2344_v38, %v557_v20  ;;  %v597_v28 = vsel %vm574_vm1, %v526_v51, %v1873_v16 }
 0x174   : > { %v1875_v24 = vpop.eup %1874  ;;  %v630_v25 = vor.u32 %v628_v18, %v627_v17  ;;  %v701_v26 = vsel %vm2380_vm4, %v627_v17, 0  ;;  %v620_v27 = vrot.slane %v618_v19, 7  ;;  %v1717_v29 = vpop.f32.mrf.mxu0 }
 0x175   : > { %v600_v30 = vsel %vm574_vm1, %v537_v53, %v1875_v24  ;;  %1888 = vtanh.f32 %v2392_v23  ;;  %v2402_v31 = vadd.f32 %v1717_v29, %v2344_v38  ;;  %v834_v32 = vrot.slane %v701_v26, 1 }
 0x176   : > { %v1877_v33 = vpop.eup %1876  ;;  %v2406_v34 = vsel %vm2380_vm4, 0, %v630_v25  ;;  %v623_v35 = vor.u32 %v621_v21, %v620_v27  ;;  %v612_v36 = vpack.c.bf16 %v600_v30, %v599_v22  ;;  %v560_v37 = vpop.f32.mrf.mxu0  ;;  %v700_v39 = vsel %vm2380_vm4, %v620_v27, 0 }
 0x177   : > { %v598_v40 = vsel %vm574_vm1, %v529_v56, %v1877_v33  ;;  %1890 = vtanh.f32 %v2402_v31  ;;  %v2414_v41 = vadd.f32 %v2344_v38, %v560_v37  ;;  %v831_v42 = vrot.slane %v700_v39, 1 }
 0x178   : > { %v1879_v43 = vpop.eup %1878  ;;  %v639_v44 = vshrl.u32 %v612_v36, 16  ;;  %v642_v45 = vshll.u32 %v612_v36, 16  ;;  %v611_v46 = vpack.c.bf16 %v598_v40, %v597_v28  ;;  %v692_v47 = vsel %vm2380_vm4, 0, %v623_v35 }
 0x179   : > { %v603_v48 = vsel %vm574_vm1, %v2357_v58, %v1879_v43  ;;  %1892 = vtanh.f32 %v2414_v41  ;;  %v830_v49 = vrot.slane %v692_v47, 1  ;;  %v833_v50 = vrot.slane %v2406_v34, 1 }
 0x17a   : > { %v1881_v38 = vpop.eup %1880  ;;  %v641_v51 = vrot.slane %v639_v44, 7  ;;  %v632_v52 = vshrl.u32 %v611_v46, 16  ;;  %v635_v53 = vshll.u32 %v611_v46, 16  ;;  %v710_v55 = vshrl.u32 %v692_v47, 16 }
 0x17b   : > { %v601_v56 = vsel %vm574_vm1, %v2362_v62, %v1881_v38  ;;  %v832_v57 = vsel %vm829_vm5, %v830_v49, %v831_v42  ;;  %v835_v59 = vsel %vm829_vm5, %v833_v50, %v834_v32  ;;  %v712_v60 = vshll.u32 %v692_v47, 16 }
 0x17c   : > { %v1883_v58 = vpop.eup %1882  ;;  %v644_v61 = vor.u32 %v642_v45, %v641_v51  ;;  %v634_v63 = vrot.slane %v632_v52, 7  ;;  %1734 = vmatprep.mubr.bf16.mxu0 %v832_v57  ;;  %v717_v0 = vshll.u32 %v700_v39, 16  ;;  %v722_v1 = vshrl.u32 %v2406_v34, 16 }
 0x17d   : > { %v604_v2 = vsel %vm574_vm1, %v2370_v3, %v1883_v58  ;;  %1735 = vmatmul.mubr.bf16.vlgmr.msra.gmra.mxu0 %v835_v59  ;;  %v714_v4 = vrot.slane %v712_v60, 1  ;;  %v724_v62 = vshll.u32 %v2406_v34, 16  ;;  %v729_v5 = vshll.u32 %v701_v26, 16 }
 0x17e   : > { %v1885_v6 = vpop.eup %1884  ;;  %v637_v7 = vor.u32 %v635_v53, %v634_v63  ;;  %v614_v8 = vpack.c.bf16 %v604_v2, %v603_v48  ;;  %v719_v10 = vrot.slane %v717_v0, 1  ;;  %v702_v11 = vsel %vm2380_vm4, %v634_v63, 0 }
 0x17f   : > { %v602_v12 = vsel %vm574_vm1, %v2378_v9, %v1885_v6  ;;  %v715_v13 = vor.u32 %v714_v4, %v710_v55  ;;  %v726_v16 = vrot.slane %v724_v62, 1  ;;  %v731_v17 = vrot.slane %v729_v5, 1 }
 0x180   : > { %v1887_v3 = vpop.eup %1886  ;;  %v653_v18 = vshrl.u32 %v614_v8, 16  ;;  %v656_v19 = vshll.u32 %v614_v8, 16  ;;  %v613_v20 = vpack.c.bf16 %v602_v12, %v601_v56  ;;  %v2440_v21 = vsel %vm2380_vm4, 0, %v637_v7 }
 0x181   : > { %v607_v22 = vsel %vm574_vm1, %v2386_v15, %v1887_v3  ;;  %v720_v24 = vsel %vm708_vm6, %v715_v13, %v719_v10  ;;  %v727_v25 = vor.u32 %v726_v16, %v722_v1  ;;  %v836_v9 = vrot.slane %v2440_v21, 1 }
 0x182   : > { %v1889_v26 = vpop.eup %1888  ;;  %v655_v27 = vrot.slane %v653_v18, 7  ;;  %v646_v28 = vshrl.u32 %v613_v20, 16  ;;  %v649_v29 = vshll.u32 %v613_v20, 16  ;;  %1086 = vmatprep.mubr.bf16.mxu1 %v720_v24  ;;  %v837_v30 = vrot.slane %v702_v11, 1 }
 0x183   : > { %v605_v32 = vsel %vm574_vm1, %v2392_v23, %v1889_v26  ;;  %1087 = vmatmul.mubr.bf16.vlgmr.msra.gmra.mxu1 %v692_v47  ;;  %v732_v33 = vsel %vm708_vm6, %v727_v25, %v731_v17  ;;  %v2453_v15 = vsel %vm2380_vm4, 0, %v644_v61  ;;  %v703_v35 = vsel %vm2380_vm4, %v641_v51, 0 }
 0x184   : > { %v1891_v36 = vpop.eup %1890  ;;  %v658_v37 = vor.u32 %v656_v19, %v655_v27  ;;  %v648_v39 = vrot.slane %v646_v28, 7  ;;  %1094 = vmatprep.mubr.bf16.mxu1 %v732_v33  ;;  %v838_v40 = vsel %vm829_vm5, %v836_v9, %v837_v30  ;;  %v839_v42 = vrot.slane %v2453_v15, 1 }
 0x185   : > { %v608_v23 = vsel %vm574_vm1, %v2402_v31, %v1891_v36  ;;  %1738 = vmatprep.mubr.bf16.mxu0 %v838_v40  ;;  %v840_v43 = vrot.slane %v703_v35, 1  ;;  %v734_v44 = vshrl.u32 %v2440_v21, 16  ;;  %v736_v45 = vshll.u32 %v2440_v21, 16 }
 0x186   : > { %v1893_v46 = vpop.eup %1892  ;;  %v651_v47 = vor.u32 %v649_v29, %v648_v39  ;;  %v616_v48 = vpack.c.bf16 %v608_v23, %v607_v22  ;;  %v741_v49 = vshll.u32 %v702_v11, 16  ;;  %v704_v50 = vsel %vm2380_vm4, %v648_v39, 0 }
 0x187   : > { %v606_v38 = vsel %vm574_vm1, %v2414_v41, %v1893_v46  ;;  %v841_v51 = vsel %vm829_vm5, %v839_v42, %v840_v43  ;;  %v738_v31 = vrot.slane %v736_v45, 1  ;;  %v843_v52 = vrot.slane %v704_v50, 1 }
 0x188   : > { %v667_v53 = vshrl.u32 %v616_v48, 16  ;;  %v670_v55 = vshll.u32 %v616_v48, 16  ;;  %v615_v56 = vpack.c.bf16 %v606_v38, %v605_v32  ;;  %1739 = vmatmul.mubr.bf16.gmra.mxu0 %v841_v51  ;;  %v743_v57 = vrot.slane %v741_v49, 1 }
 0x189   : > { %v739_v59 = vor.u32 %v738_v31, %v734_v44  ;;  %v696_v60 = vsel %vm2380_vm4, 0, %v651_v47  ;;  %v2474_v58 = vsel %vm2380_vm4, 0, %v658_v37  ;;  %v705_v54 = vsel %vm2380_vm4, %v655_v27, 0 }
 0x18a   : > { %v669_v41 = vrot.slane %v667_v53, 7  ;;  %v660_v61 = vshrl.u32 %v615_v56, 16  ;;  %v663_v63 = vshll.u32 %v615_v56, 16  ;;  %v842_v0 = vrot.slane %v696_v60, 1 }
 0x18b   : > { %1095 = vmatmul.mubr.bf16.gmra.mxu1 %v2406_v34  ;;  %v744_v1 = vsel %vm708_vm6, %v739_v59, %v743_v57  ;;  %v845_v2 = vrot.slane %v2474_v58, 1  ;;  %v748_v6 = vshll.u32 %v2453_v15, 16  ;;  %v846_v7 = vrot.slane %v705_v54, 1 }
 0x18c   : > { %v672_v4 = vor.u32 %v670_v55, %v669_v41  ;;  %v662_v62 = vrot.slane %v660_v61, 7  ;;  %1102 = vmatprep.mubr.bf16.mxu1 %v744_v1  ;;  %v844_v5 = vsel %vm829_vm5, %v842_v0, %v843_v52  ;;  %v746_v8 = vshrl.u32 %v2453_v15, 16 }
 0x18d   : > { %1742 = vmatprep.mubr.bf16.mxu0 %v844_v5  ;;  %v753_v10 = vshll.u32 %v703_v35, 16  ;;  %v707_v11 = vsel %vm2380_vm4, %v669_v41, 0  ;;  %v750_v12 = vrot.slane %v748_v6, 1  ;;  %v847_v17 = vsel %vm829_vm5, %v845_v2, %v846_v7 }
 0x18e   : > { %v665_v34 = vor.u32 %v663_v63, %v662_v62  ;;  %v706_v13 = vsel %vm2380_vm4, %v662_v62, 0  ;;  %v699_v16 = vsel %vm2380_vm4, 0, %v672_v4  ;;  %v760_v20 = vshll.u32 %v696_v60, 16 }
 0x18f   : > { %v849_v3 = vrot.slane %v706_v13, 1  ;;  %v751_v18 = vor.u32 %v750_v12, %v746_v8  ;;  %v755_v22 = vrot.slane %v753_v10, 1  ;;  %v851_v25 = vrot.slane %v699_v16, 1 }
 0x190   : > { %1743 = vmatmul.mubr.bf16.gmra.mxu0 %v847_v17  ;;  %v698_v19 = vsel %vm2380_vm4, 0, %v665_v34  ;;  %v852_v9 = vrot.slane %v707_v11, 1  ;;  %v762_v28 = vrot.slane %v760_v20, 1  ;;  %v758_v30 = vshrl.u32 %v696_v60, 16 }
 0x191   : > { %v848_v24 = vrot.slane %v698_v19, 1  ;;  %v756_v26 = vsel %vm708_vm6, %v751_v18, %v755_v22  ;;  %v765_v32 = vshll.u32 %v704_v50, 16  ;;  %v772_v33 = vshll.u32 %v2474_v58, 16 }
 0x192   : > { %v853_v29 = vsel %vm829_vm5, %v851_v25, %v852_v9  ;;  %v763_v14 = vor.u32 %v762_v28, %v758_v30  ;;  %v770_v37 = vshrl.u32 %v2474_v58, 16  ;;  %v777_v39 = vshll.u32 %v705_v54, 16 }
 0x193   : > { %1103 = vmatmul.mubr.bf16.gmra.mxu1 %v2440_v21  ;;  %v850_v27 = vsel %vm829_vm5, %v848_v24, %v849_v3  ;;  %v767_v35 = vrot.slane %v765_v32, 1  ;;  %v774_v36 = vrot.slane %v772_v33, 1  ;;  %v784_v42 = vshll.u32 %v698_v19, 16 }
 0x194   : > { %1110 = vmatprep.mubr.bf16.mxu1 %v756_v26  ;;  %1746 = vmatprep.mubr.bf16.mxu0 %v850_v27  ;;  %v779_v23 = vrot.slane %v777_v39, 1  ;;  %v782_v44 = vshrl.u32 %v698_v19, 16  ;;  %v789_v46 = vshll.u32 %v706_v13, 16  ;;  %v794_v50 = vshrl.u32 %v699_v16, 16 }
 0x195   : > { %v768_v21 = vsel %vm708_vm6, %v763_v14, %v767_v35  ;;  %v775_v40 = vor.u32 %v774_v36, %v770_v37  ;;  %v786_v45 = vrot.slane %v784_v42, 1  ;;  %v801_v51 = vshll.u32 %v707_v11, 16 }
 0x196   : > { %v791_v48 = vrot.slane %v789_v46, 1 }
 0x197   : > { %v780_v43 = vsel %vm708_vm6, %v775_v40, %v779_v23  ;;  %v787_v47 = vor.u32 %v786_v45, %v782_v44  ;;  %v803_v52 = vrot.slane %v801_v51, 1 }
 0x198   : > { %1747 = vmatmul.mubr.bf16.gmra.mxu0 %v853_v29 }
 0x199   : > { %v792_v49 = vsel %vm708_vm6, %v787_v47, %v791_v48 }
 0x19b   : > { %1111 = vmatmul.mubr.bf16.gmra.mxu1 %v2453_v15  ;;  %v796_v15 = vshll.u32 %v699_v16, 16 }
 0x19c   : > { %1118 = vmatprep.mubr.bf16.mxu1 %v768_v21  ;;  %v2508_v21 = vld [vmem:[%s2575_s5] ss:$0 sm:$0xff] }
 0x19d   : > { %v798_v38 = vrot.slane %v796_v15, 1 }
 0x19f   : > { %v799_v31 = vor.u32 %v798_v38, %v794_v50 }
 0x1a1   : > { %v804_v53 = vsel %vm708_vm6, %v799_v31, %v803_v52 }
 0x1a3   : > { %1119 = vmatmul.mubr.bf16.gmra.mxu1 %v696_v60 }
 0x1a4   : > { %1126 = vmatprep.mubr.bf16.mxu1 %v780_v43 }
 0x1ab   : > { %1127 = vmatmul.mubr.bf16.gmra.mxu1 %v2474_v58 }
 0x1ac   : > { %1134 = vmatprep.mubr.bf16.mxu1 %v792_v49 }
 0x1b3   : > { %1135 = vmatmul.mubr.bf16.gmra.mxu1 %v698_v19 }
 0x1b4   : > { %1142 = vmatprep.mubr.bf16.mxu1 %v804_v53 }
 0x1bb   : > { %1143 = vmatmul.mubr.bf16.gmra.mxu1 %v699_v16 }
 0x23d   : > { %v1736_v55 = vpop.f32.mrf.mxu0 }
 0x23f   : > { %v1185_v56 = vpop.f32.mrf.mxu0 }
 0x241   : > { %v1737_v60 = vpop.f32.mrf.mxu0 }
 0x243   : > { %v1626_v57 = vpop.f32.mrf.mxu1  ;;  %v1188_v41 = vpop.f32.mrf.mxu0 }
 0x245   : > { %v1627_v59 = vpop.f32.mrf.mxu1 }
 0x246   : > { %v1628_v35 = vadd.f32 %v1627_v59, %v1626_v57 }
 0x247   : > { %v1629_v54 = vpop.f32.mrf.mxu1 }
 0x248   : > { %v1740_v0 = vpop.f32.mrf.mxu0  ;;  %v1186_v15 = vadd.f32 %v1628_v35, %v1185_v56 }
 0x249   : > { %v1630_v58 = vpop.f32.mrf.mxu1 }
 0x24a   : > { %v1201_v4 = vpop.f32.mrf.mxu0  ;;  %v1631_v27 = vadd.f32 %v1630_v58, %v1629_v54 }
 0x24b   : > { %v1632_v61 = vpop.f32.mrf.mxu1 }
 0x24c   : > { %v1741_v6 = vpop.f32.mrf.mxu0  ;;  %v1189_v42 = vadd.f32 %v1631_v27, %v1188_v41 }
 0x24d   : > { %v1633_v63 = vpop.f32.mrf.mxu1 }
 0x24e   : > { %v1204_v10 = vpop.f32.mrf.mxu0  ;;  %v1634_v20 = vadd.f32 %v1633_v63, %v1632_v61  ;;  %v1256_v53 = vadd.f32 %v2508_v21, %v1189_v42  ;;  %v1255_v61 = vadd.f32 %v2508_v21, %v1186_v15 }
 0x24f   : > { %v1635_v1 = vpop.f32.mrf.mxu1 }
 0x250   : > { %v1744_v12 = vpop.f32.mrf.mxu0  ;;  %v1194_v14 = vadd.f32 %v1736_v55, %v1634_v20 }
 0x251   : > { %v1636_v2 = vpop.f32.mrf.mxu1 }
 0x252   : > { %v1637_v17 = vadd.f32 %v1636_v2, %v1635_v1  ;;  %v1217_v3 = vpop.f32.mrf.mxu0  ;;  %v1257_v47 = vadd.f32 %v2508_v21, %v1194_v14 }
 0x253   : > { %v1638_v62 = vpop.f32.mrf.mxu1 }
 0x254   : > { %v1197_v9 = vadd.f32 %v1737_v60, %v1637_v17  ;;  %v1745_v28 = vpop.f32.mrf.mxu0  ;;  %v1273_v58 = vmax.f32 %v1257_v47, 0.0 }
 0x255   : > { %v1639_v5 = vpop.f32.mrf.mxu1 }
 0x256   : > { %v1640_v24 = vadd.f32 %v1639_v5, %v1638_v62  ;;  %v1258_v39 = vadd.f32 %v2508_v21, %v1197_v9  ;;  %v1220_v23 = vpop.f32.mrf.mxu0  ;;  %v1272_v5 = vmax.f32 %v1256_v53, 0.0 }
 0x257   : > { %v1641_v7 = vpop.f32.mrf.mxu1 }
 0x258   : > { %v1202_v36 = vadd.f32 %v1640_v24, %v1201_v4  ;;  %v1274_v51 = vmax.f32 %v1258_v39, 0.0  ;;  %v1748_v55 = vpop.f32.mrf.mxu0 }
 0x259   : > { %v1642_v8 = vpop.f32.mrf.mxu1 }
 0x25a   : > { %v1643_v18 = vadd.f32 %v1642_v8, %v1641_v7  ;;  %v1259_v49 = vadd.f32 %v2508_v21, %v1202_v36  ;;  %v1294_v2 = vmax.f32 %v1273_v58, %v1274_v51  ;;  %v1233_v7 = vpop.f32.mrf.mxu0 }
 0x25b   : > { %v1644_v11 = vpop.f32.mrf.mxu1 }
 0x25c   : > { %v1205_v29 = vadd.f32 %v1643_v18, %v1204_v10  ;;  %v1275_v63 = vmax.f32 %v1259_v49, 0.0  ;;  %v1749_v24 = vpop.f32.mrf.mxu0 }
 0x25d   : > { %v1645_v34 = vpop.f32.mrf.mxu1 }
 0x25e   : > { %v1646_v26 = vadd.f32 %v1645_v34, %v1644_v11  ;;  %v1260_v43 = vadd.f32 %v2508_v21, %v1205_v29 }
 0x25f   : > { %v1647_v13 = vpop.f32.mrf.mxu1 }
 0x260   : > { %v1210_v40 = vadd.f32 %v1740_v0, %v1646_v26  ;;  %v1276_v57 = vmax.f32 %v1260_v43, 0.0 }
 0x261   : > { %v1648_v16 = vpop.f32.mrf.mxu1 }
 0x262   : > { %v1649_v22 = vadd.f32 %v1648_v16, %v1647_v13  ;;  %v1261_v31 = vadd.f32 %v2508_v21, %v1210_v40  ;;  %v1271_v16 = vmax.f32 %v1255_v61, 0.0 }
 0x263   : > { %v1650_v19 = vpop.f32.mrf.mxu1 }
 0x264   : > { %v1213_v33 = vadd.f32 %v1741_v6, %v1649_v22  ;;  %v1277_v4 = vmax.f32 %v1261_v31, 0.0  ;;  %v1301_v6 = vmax.f32 %v1275_v63, %v1276_v57  ;;  %v1287_v20 = vmax.f32 %v1271_v16, %v1272_v5 }
 0x265   : > { %v1651_v25 = vpop.f32.mrf.mxu1 }
 0x266   : > { %v1652_v30 = vadd.f32 %v1651_v25, %v1650_v19  ;;  %v1262_v48 = vadd.f32 %v2508_v21, %v1213_v33  ;;  %v1302_v22 = vrot.slane %v1301_v6, 4  ;;  %v1288_v35 = vrot.slane %v1287_v20, 4 }
 0x267   : > { %v1653_v32 = vpop.f32.mrf.mxu1 }
 0x268   : > { %v1218_v44 = vadd.f32 %v1652_v30, %v1217_v3  ;;  %v1278_v41 = vmax.f32 %v1262_v48, 0.0  ;;  %v1295_v3 = vrot.slane %v1294_v2, 4  ;;  %v1303_v36 = vmax.f32 %v1301_v6, %v1302_v22 }
 0x269   : > { %v1654_v37 = vpop.f32.mrf.mxu1  ;;  %v1289_v49 = vmax.f32 %v1287_v20, %v1288_v35 }
 0x26a   : > { %v1655_v45 = vadd.f32 %v1654_v37, %v1653_v32  ;;  %v1263_v59 = vadd.f32 %v2508_v21, %v1218_v44  ;;  %v1308_v11 = vmax.f32 %v1277_v4, %v1278_v41  ;;  %v1296_v14 = vmax.f32 %v1294_v2, %v1295_v3  ;;  %v1236_v37 = vpop.f32.mrf.mxu0 }
 0x26b   : > { %v1656_v46 = vpop.f32.mrf.mxu1 }
 0x26c   : > { %v1221_v50 = vadd.f32 %v1655_v45, %v1220_v23  ;;  %v1279_v8 = vmax.f32 %v1263_v59, 0.0  ;;  %v1309_v9 = vrot.slane %v1308_v11, 4 }
 0x26d   : > { %v1657_v38 = vpop.f32.mrf.mxu1 }
 0x26e   : > { %v1658_v52 = vadd.f32 %v1657_v38, %v1656_v46  ;;  %v1264_v60 = vadd.f32 %v2508_v21, %v1221_v50  ;;  %v1310_v40 = vmax.f32 %v1308_v11, %v1309_v9  ;;  %v1297_v46 = vrot.slane %v1296_v14, 2 }
 0x26f   : > { %v1659_v54 = vpop.f32.mrf.mxu1  ;;  %v1304_v50 = vrot.slane %v1303_v36, 2 }
 0x270   : > { %v1226_v56 = vadd.f32 %v1744_v12, %v1658_v52  ;;  %v1280_v0 = vmax.f32 %v1264_v60, 0.0  ;;  %v1311_v51 = vrot.slane %v1310_v40, 2  ;;  %v1298_v60 = vmax.f32 %v1296_v14, %v1297_v46 }
 0x271   : > { %v1660_v1 = vpop.f32.mrf.mxu1  ;;  %v1305_v61 = vmax.f32 %v1303_v36, %v1304_v50 }
 0x272   : > { %v1661_v62 = vadd.f32 %v1660_v1, %v1659_v54  ;;  %v1265_v34 = vadd.f32 %v2508_v21, %v1226_v56  ;;  %v1315_v17 = vmax.f32 %v1279_v8, %v1280_v0  ;;  %v1290_v56 = vrot.slane %v1289_v49, 2 }
 0x273   : > { %v1662_v10 = vpop.f32.mrf.mxu1  ;;  %v1312_v63 = vmax.f32 %v1310_v40, %v1311_v51  ;;  %v1306_v8 = vrot.slane %v1305_v61, 1 }
 0x274   : > { %v1229_v13 = vadd.f32 %v1745_v28, %v1661_v62  ;;  %v1281_v26 = vmax.f32 %v1265_v34, 0.0  ;;  %v1316_v30 = vrot.slane %v1315_v17, 4  ;;  %v1299_v62 = vrot.slane %v1298_v60, 1 }
 0x275   : > { %v1663_v12 = vpop.f32.mrf.mxu1  ;;  %v1313_v11 = vrot.slane %v1312_v63, 1  ;;  %v1307_v22 = vmax.f32 %v1305_v61, %v1306_v8 }
 0x276   : > { %v1266_v18 = vadd.f32 %v2508_v21, %v1229_v13  ;;  %v1664_v19 = vadd.f32 %v1663_v12, %v1662_v10  ;;  %v1317_v44 = vmax.f32 %v1315_v17, %v1316_v30  ;;  %v1343_v10 = vld [vmem:[%s2311_s18] sm:$0xff]  ;;  %v1300_v3 = vmax.f32 %v1298_v60, %v1299_v62 }
 0x277   : > { %v1665_v25 = vpop.f32.mrf.mxu1  ;;  %v1345_v17 = vrot.slane %v1343_v10, 1  ;;  %v1348_v30 = vrot.slane %v1343_v10, 4  ;;  %v1351_v50 = vrot.slane %v1343_v10, 7 }
 0x278   : > { %v1282_v27 = vmax.f32 %v1266_v18, 0.0  ;;  %v1234_v29 = vadd.f32 %v1664_v19, %v1233_v7  ;;  %v1318_v57 = vrot.slane %v1317_v44, 2  ;;  %v1291_v7 = vmax.f32 %v1289_v49, %v1290_v56 }
 0x279   : > { %v1666_v32 = vpop.f32.mrf.mxu1 }
 0x27a   : > { %v1322_v33 = vmax.f32 %v1281_v26, %v1282_v27  ;;  %v1667_v28 = vadd.f32 %v1666_v32, %v1665_v25  ;;  %v1267_v23 = vadd.f32 %v2508_v21, %v1234_v29  ;;  %v1319_v4 = vmax.f32 %v1317_v44, %v1318_v57 }
 0x27b   : > { %v1668_v39 = vpop.f32.mrf.mxu1  ;;  %v1347_v25 = vrot.slane %v1343_v10, 3  ;;  %v1292_v9 = vrot.slane %v1291_v7, 1  ;;  %v1314_v26 = vmax.f32 %v1312_v63, %v1313_v11  ;;  %v1361_v32 = vadd.f32 %v1345_v17, %v1300_v3 }
 0x27c   : > { %v1323_v42 = vrot.slane %v1322_v33, 4  ;;  %v1237_v43 = vadd.f32 %v1667_v28, %v1236_v37  ;;  %v1283_v31 = vmax.f32 %v1267_v23, 0.0  ;;  %v1320_v12 = vrot.slane %v1319_v4, 1 }
 0x27d   : > { %v1669_v45 = vpop.f32.mrf.mxu1  ;;  %v1350_v37 = vrot.slane %v1343_v10, 6  ;;  %v1363_v40 = vadd.f32 %v1347_v25, %v1314_v26 }
 0x27e   : > { %v1324_v47 = vmax.f32 %v1322_v33, %v1323_v42  ;;  %v1268_v48 = vadd.f32 %v2508_v21, %v1237_v43  ;;  %v1670_v15 = vadd.f32 %v1669_v45, %v1668_v39  ;;  %v1321_v29 = vmax.f32 %v1319_v4, %v1320_v12 }
 0x27f   : > { %v1671_v38 = vpop.f32.mrf.mxu1  ;;  %v1349_v33 = vrot.slane %v1343_v10, 5  ;;  %v1293_v39 = vmax.f32 %v1291_v7, %v1292_v9  ;;  %v1376_v43 = vrot.slane %v1361_v32, 7 }
 0x280   : > { %v1284_v52 = vmax.f32 %v1268_v48, 0.0  ;;  %v1242_v53 = vadd.f32 %v1748_v55, %v1670_v15  ;;  %v1325_v54 = vrot.slane %v1324_v47, 2  ;;  %v1364_v23 = vadd.f32 %v1348_v30, %v1321_v29 }
 0x281   : > { %v1672_v59 = vpop.f32.mrf.mxu1  ;;  %v1360_v48 = vadd.f32 %v1343_v10, %v1293_v39  ;;  %v1382_v15 = vrot.slane %v1363_v40, 5 }
 0x282   : > { %v1329_v58 = vmax.f32 %v1283_v31, %v1284_v52  ;;  %v1673_v41 = vadd.f32 %v1672_v59, %v1671_v38  ;;  %v1269_v1 = vadd.f32 %v2508_v21, %v1242_v53  ;;  %v1326_v5 = vmax.f32 %v1324_v47, %v1325_v54 }
 0x283   : > { %v1385_v38 = vrot.slane %v1364_v23, 4  ;;  %v1378_v51 = vsel %vm1377_vm7, %v1376_v43, %v1360_v48 }
 0x284   : > { %v1330_v0 = vrot.slane %v1329_v58, 4  ;;  %v1245_v2 = vadd.f32 %v1749_v24, %v1673_v41  ;;  %v1285_v13 = vmax.f32 %v1269_v1, 0.0  ;;  %v1327_v18 = vrot.slane %v1326_v5, 1 }
 0x285   : > { %v1346_v24 = vrot.slane %v1343_v10, 2 }
 0x286   : > { %v1331_v6 = vmax.f32 %v1329_v58, %v1330_v0  ;;  %v1270_v55 = vadd.f32 %v2508_v21, %v1245_v2  ;;  %v1328_v14 = vmax.f32 %v1326_v5, %v1327_v18 }
 0x287   : > { %v1362_v35 = vadd.f32 %v1346_v24, %v1307_v22 }
 0x288   : > { %v1332_v34 = vrot.slane %v1331_v6, 2  ;;  %v1286_v16 = vmax.f32 %v1270_v55, 0.0  ;;  %v1365_v44 = vadd.f32 %v1349_v33, %v1328_v14 }
 0x289   : > { %v1379_v46 = vrot.slane %v1362_v35, 6 }
 0x28a   : > { %v1333_v19 = vmax.f32 %v1331_v6, %v1332_v34  ;;  %v1336_v20 = vmax.f32 %v1285_v13, %v1286_v16  ;;  %v1388_v31 = vrot.slane %v1365_v44, 3 }
 0x28b   : > { %v1381_v53 = vsel %vm1380_vm8, %v1379_v46, %v1378_v51 }
 0x28c   : > { %v1334_v27 = vrot.slane %v1333_v19, 1  ;;  %v1337_v21 = vrot.slane %v1336_v20, 4  ;;  %v1384_v60 = vsel %vm1383_vm9, %v1382_v15, %v1381_v53 }
 0x28d   : > { %v1387_v54 = vsel %vm1386_vm10, %v1385_v38, %v1384_v60 }
 0x28e   : > { %v1338_v28 = vmax.f32 %v1336_v20, %v1337_v21  ;;  %v1335_v36 = vmax.f32 %v1333_v19, %v1334_v27  ;;  %v1390_v58 = vsel %vm1389_vm11, %v1388_v31, %v1387_v54 }
 0x290   : > { %v1339_v42 = vrot.slane %v1338_v28, 2  ;;  %v1366_v47 = vadd.f32 %v1350_v37, %v1335_v36 }
 0x292   : > { %v1340_v45 = vmax.f32 %v1338_v28, %v1339_v42  ;;  %v1391_v57 = vrot.slane %v1366_v47, 2 }
 0x294   : > { %v1341_v49 = vrot.slane %v1340_v45, 1  ;;  %v1393_v56 = vsel %vm1392_vm12, %v1391_v57, %v1390_v58 }
 0x296   : > { %v1342_v52 = vmax.f32 %v1340_v45, %v1341_v49 }
 0x298   : > { %v1367_v59 = vadd.f32 %v1351_v50, %v1342_v52 }
 0x29a   : > { %v1394_v41 = vrot.slane %v1367_v59, 1 }
 0x29c   : > { %v1396_v61 = vsel %vm1395_vm13, %v1394_v41, %v1393_v56 }
 0x29d   : > { %1398 = vst [vmem:[%s336_s13] sm:$0xff] %v1396_v61 }
 0x29e   : > { %2015 = shalt.err (!%p2012_p4)
}
 0x29f   : > { %s2016_s0 = scalar_lea.hbm %s2533_s14, 128  ;;  %s2020_s29 = scalar_lea.hbm %s2576_s6, 256 }
 0x2a0   : > { %p2017_p6 = scmp.ne.s32.totalorder %s2533_s14, %s2016_s0  ;;  %p2021_p2 = scmp.lt.s32.totalorder %s2533_s14, %s2576_s6 }
 0x2a1   : > { %p2022_p5 = scmp.lt.s32.totalorder %s2020_s29, %s2016_s0 }
 0x2a2   : > { %p2018_p7 = pnand %p2017_p6, %p2608_p10 }
 0x2a3   : > { %p2023_p12 = por %p2022_p5, %p2021_p2 }
 0x2a4   : > { %p2019_p8 = pneg %p2018_p7 }
 0x2a6   : > { %p2024_p0 = pnand %p2023_p12, %p2019_p8 }
 0x2a8   : > { %2027 = shalt.err (!%p2024_p0)
}
 0x2a9   : > { %1762 = dma.vmem_to_hbm [thread:$0]  (%p2608_p10), %s1414_s8, 128, %s2533_s14, %s1400_s16  }
 0x2aa PF: > { %s1425_s26 = sand.u32 1, %s2066_s21   ;;  %p2609_p3 = scmp.ne.s32.totalorder %s2587_s28, 0 }
 0x2ab   : > { %p2610_p11 = scmp.ge.s32.totalorder %s2078_s24, 2  ;;  %s1426_s12 = scalar_lea.sflag [#allocation4], %s1425_s26 }
 0x2ad   : > { %p1779_p9 = pnand %p2610_p11, %p2609_p3 }
 0x2af   : > { %p1780_p13 = pneg %p1779_p9 }
 0x2b1   : > { %2061 = dma.done.wait (%p1780_p13), %s1426_s12, 128  }
 0x2b2   : > { %2063 = vsyncadd (%p1780_p13), %s1426_s12, 4294967168  ;;  %s2611_s15 = sld [smem:[#allocation16_spill]]  ;;  %p23_p1 = scmp.ge.s32.totalorder %s2200_s19, 4  }
 0x2b3   : > { %s2612_s21 = smov %s2070_s22  ;;  %s2613_s22 = smov %s2074_s23 }
 0x2b4   : > { %s2615_s24 = smov %s2200_s19  ;;  %25 = sbr.rel (!%p23_p1) target bundleno = 12 (0xc), region = 110 }
 0x2b8   : > { %s2614_s23 = smov %s2611_s15 }
 0x2b9   :  { %1431 = vsyncpa [#allocation3], 1 }
 0x2ba   :  { %1433 = vsyncpa [#allocation3 + $0x1], 1 }
 0x2bb   :  { %1434 = vsyncpa [#allocation6], 1 }
 0x2bc   :  { %1436 = vsyncpa [#allocation6 + $0x1], 1 }
 0x2bd   :  { %1437 = vsyncpa [#allocation9], 1 }
 0x2be   :  { %1438 = vsyncpa [#allocation4], 1 }
 0x2bf   :  { %1440 = vsyncpa [#allocation4 + $0x1], 1 }

</bundles_post_ra>
